<compile_context>
chip_gen: v6e
topology: v6e:2x2x1
jax: 0.10.0
libtpu: 0.0.40
codegen_flags: <defaults>
</compile_context>

<pallas_src>
import functools

import jax
import jax.numpy as jnp
from jax.experimental import pallas as pl
from jax.experimental.pallas import tpu as pltpu


def _pick_batch_block(batch, bytes_per_sample, budget_bytes=24 << 20):
    """Largest batch block with 2 inputs x 2 pipeline buffers under `budget_bytes`."""
    cap = max(1, budget_bytes // (4 * bytes_per_sample))
    if cap >= batch:
        return batch
    divisors = [b for b in range(1, min(cap, batch) + 1) if batch % b == 0]
    mult8 = [b for b in divisors if b % 8 == 0]
    return max(mult8) if mult8 else max(divisors)


def _ohkm_mse_kernel(*refs, topk, use_target_weight):
    """One batch block per grid step.

    pred_ref, gt_ref: (B_blk, J, HW) native dtype; tw_ref (optional): (B_blk, J) f32;
    out_ref: (1, 8, 128) f32 lane-dense partial sum (same value replicated).
    """
    if use_target_weight:
        pred_ref, gt_ref, tw_ref, out_ref = refs
    else:
        pred_ref, gt_ref, out_ref = refs

    pred = pred_ref[...].astype(jnp.float32)            # (Bb, J, HW)
    gt = gt_ref[...].astype(jnp.float32)                # (Bb, J, HW)

    # Per-element path: a single subtract + square; everything else is per-joint scalars.
    d = pred - gt
    ssq = jnp.sum(d * d, axis=2)                        # (Bb, J) lane reduce
    hw = pred_ref.shape[2]
    per_joint = ssq * jnp.float32(0.5 / hw)             # 0.5 * mean over HW
    if use_target_weight:
        w = tw_ref[...]                                  # (Bb, J) f32
        per_joint = per_joint * (w * w)                  # == 0.5*mean((w*p - w*g)^2)

    bb, j = per_joint.shape
    lane = jax.lax.broadcasted_iota(jnp.int32, (bb, j), 1)
    neg_inf = jnp.float32(-jnp.inf)

    # Iterative top-k: each pass takes the per-sample max and knocks out exactly one
    # occurrence of it (first index on ties), so the sum equals torch.topk's sum.
    work = per_joint
    acc = jnp.zeros((bb, 1), jnp.float32)
    for _ in range(topk):                                # static unroll, topk is small
        m = jnp.max(work, axis=1, keepdims=True)         # (Bb, 1)
        acc = acc + m
        is_max = work == m
        first = jnp.min(jnp.where(is_max, lane, j), axis=1, keepdims=True)
        work = jnp.where(lane == first, neg_inf, work)

    block_sum = jnp.sum(acc)                             # sum over samples in this block
    out_ref[...] = jnp.broadcast_to(block_sum, out_ref.shape)   # lane-dense store


def joints_ohkm_mse_loss(output, target, target_weight, *, use_target_weight=True, topk=8):
    """output, target: (B, J, H, W) NCHW; target_weight: (B, J, 1). Returns scalar f32."""
    B, J, H, W = output.shape
    HW = H * W
    assert topk <= J, "topk must be <= num_joints"

    # Contiguous reshapes only: no transpose, no dtype cast of the heatmaps (bf16 stays bf16).
    pred = output.reshape(B, J, HW)
    gt = target.reshape(B, J, HW)

    bytes_per_sample = J * HW * jnp.dtype(output.dtype).itemsize
    b_blk = _pick_batch_block(B, bytes_per_sample)
    num_blocks = B // b_blk

    kernel = functools.partial(
        _ohkm_mse_kernel, topk=topk, use_target_weight=use_target_weight
    )

    in_specs = [
        pl.BlockSpec((b_blk, J, HW), lambda i: (i, 0, 0)),   # pred
        pl.BlockSpec((b_blk, J, HW), lambda i: (i, 0, 0)),   # gt
    ]
    args = [pred, gt]
    if use_target_weight:
        tw = target_weight.reshape(B, J).astype(jnp.float32)  # tiny (B, J) scale table
        in_specs.append(pl.BlockSpec((b_blk, J), lambda i: (i, 0)))
        args.append(tw)

    partial_sums = pl.pallas_call(
        kernel,
        out_shape=jax.ShapeDtypeStruct((num_blocks, 8, 128), jnp.float32),
        grid_spec=pltpu.PrefetchScalarGridSpec(
            num_scalar_prefetch=0,
            grid=(num_blocks,),                              # tiled over batch
            in_specs=in_specs,
            out_specs=pl.BlockSpec((1, 8, 128), lambda i: (i, 0, 0)),
        ),
        compiler_params=pltpu.CompilerParams(
            dimension_semantics=("parallel",),               # megacore-splittable on v7x
            vmem_limit_bytes=32 * 1024 * 1024,               # safe on v5e/v6e/v7x
        ),
    )(*args)

    # Tiny final reduction in the wrapper: mean over batch of (topk sum / topk).
    return jnp.sum(partial_sums[:, 0, 0]) / jnp.float32(topk * B)


def _reference(output, target, target_weight, *, use_target_weight=True, topk=8):
    """Pure-JAX reference mirroring the PyTorch module."""
    B, J, H, W = output.shape
    pred = output.reshape(B, J, -1).astype(jnp.float32)
    gt = target.reshape(B, J, -1).astype(jnp.float32)
    if use_target_weight:
        w = target_weight.reshape(B, J, 1).astype(jnp.float32)
        pred = pred * w
        gt = gt * w
    per_joint = 0.5 * jnp.mean((pred - gt) ** 2, axis=2)          # (B, J)
    topv, _ = jax.lax.top_k(per_joint, topk)
    return jnp.mean(jnp.sum(topv, axis=1) / topk)


if __name__ == "__main__":
    # Small shapes consistent with the module: batch=2, num_joints=16, 16x16 heatmaps.
    B, J, H, W = 2, 16, 16, 16
    TOPK = 8
    key = jax.random.PRNGKey(0)
    k1, k2, k3 = jax.random.split(key, 3)
    output = jax.random.normal(k1, (B, J, H, W), jnp.float32)
    target = jax.random.normal(k2, (B, J, H, W), jnp.float32)
    target_weight = jax.random.uniform(k3, (B, J, 1), jnp.float32)

    loss = joints_ohkm_mse_loss(output, target, target_weight,
                                use_target_weight=True, topk=TOPK)
    loss = jax.block_until_ready(loss)

    ref = _reference(output, target, target_weight, use_target_weight=True, topk=TOPK)
    assert jnp.allclose(loss, ref, rtol=1e-5, atol=1e-6), (loss, ref)
    print("KERNEL_OK")
</pallas_src>

<mosaic_0001>
module attributes {stable_mosaic.version = 11 : i64} {
  func.func @_ohkm_mse_kernel(%arg0: i32, %arg1: memref<2x16x256xf32, #tpu.memory_space<vmem>>, %arg2: memref<2x16x256xf32, #tpu.memory_space<vmem>>, %arg3: memref<2x16xf32, #tpu.memory_space<vmem>>, %arg4: memref<1x8x128xf32, #tpu.memory_space<vmem>>) attributes {dimension_semantics = [#tpu.dimension_semantics<parallel>], iteration_bounds = array<i64: 1>, scalar_prefetch = 0 : i64, scratch_operands = 0 : i64, tpu.core_type = #tpu.core_type<tc>, window_params = [{transform_indices = @transform_0, window_bounds = array<i64: 2, 16, 256>}, {transform_indices = @transform_1, window_bounds = array<i64: 2, 16, 256>}, {transform_indices = @transform_2, window_bounds = array<i64: 2, 16>}, {transform_indices = @transform_3, window_bounds = array<i64: 1, 8, 128>}]} {
    %c0 = arith.constant 0 : index
    %c0_0 = arith.constant 0 : index
    %c0_1 = arith.constant 0 : index
    %0 = vector.load %arg1[%c0, %c0_0, %c0_1] : memref<2x16x256xf32, #tpu.memory_space<vmem>>, vector<2x16x256xf32>
    %c0_2 = arith.constant 0 : index
    %c0_3 = arith.constant 0 : index
    %c0_4 = arith.constant 0 : index
    %1 = vector.load %arg2[%c0_2, %c0_3, %c0_4] : memref<2x16x256xf32, #tpu.memory_space<vmem>>, vector<2x16x256xf32>
    %2 = arith.subf %0, %1 : vector<2x16x256xf32>
    %3 = arith.mulf %2, %2 : vector<2x16x256xf32>
    %cst = arith.constant dense<0.000000e+00> : vector<2x16xf32>
    %4 = vector.multi_reduction <add>, %3, %cst [2] : vector<2x16x256xf32> to vector<2x16xf32>
    %cst_5 = arith.constant 0.001953125 : f32
    %5 = vector.broadcast %cst_5 : f32 to vector<2x16xf32>
    %6 = arith.mulf %4, %5 : vector<2x16xf32>
    %c0_6 = arith.constant 0 : index
    %c0_7 = arith.constant 0 : index
    %7 = vector.load %arg3[%c0_6, %c0_7] : memref<2x16xf32, #tpu.memory_space<vmem>>, vector<2x16xf32>
    %8 = arith.mulf %7, %7 : vector<2x16xf32>
    %9 = arith.mulf %6, %8 : vector<2x16xf32>
    %10 = tpu.iota {dimensions = array<i32: 1>} : vector<2x16xi32>
    %cst_8 = arith.constant 0.000000e+00 : f32
    %11 = vector.broadcast %cst_8 : f32 to vector<2x1xf32>
    %cst_9 = arith.constant dense<0xFF800000> : vector<2xf32>
    %12 = vector.multi_reduction <maximumf>, %9, %cst_9 [1] : vector<2x16xf32> to vector<2xf32>
    %13 = vector.shape_cast %12 : vector<2xf32> to vector<2x1xf32>
    %14 = arith.addf %11, %13 : vector<2x1xf32>
    %15 = vector.broadcast %13 : vector<2x1xf32> to vector<2x16xf32>
    %16 = arith.cmpf oeq, %9, %15 : vector<2x16xf32>
    %c16_i32 = arith.constant 16 : i32
    %17 = vector.broadcast %c16_i32 : i32 to vector<2x16xi32>
    %18 = arith.select %16, %10, %17 : vector<2x16xi1>, vector<2x16xi32>
    %cst_10 = arith.constant dense<2147483647> : vector<2xi32>
    %19 = vector.multi_reduction <minsi>, %18, %cst_10 [1] : vector<2x16xi32> to vector<2xi32>
    %20 = vector.shape_cast %19 : vector<2xi32> to vector<2x1xi32>
    %21 = vector.broadcast %20 : vector<2x1xi32> to vector<2x16xi32>
    %22 = arith.cmpi eq, %10, %21 : vector<2x16xi32>
    %cst_11 = arith.constant 0xFF800000 : f32
    %23 = vector.broadcast %cst_11 : f32 to vector<2x16xf32>
    %24 = arith.select %22, %23, %9 : vector<2x16xi1>, vector<2x16xf32>
    %cst_12 = arith.constant dense<0xFF800000> : vector<2xf32>
    %25 = vector.multi_reduction <maximumf>, %24, %cst_12 [1] : vector<2x16xf32> to vector<2xf32>
    %26 = vector.shape_cast %25 : vector<2xf32> to vector<2x1xf32>
    %27 = arith.addf %14, %26 : vector<2x1xf32>
    %28 = vector.broadcast %26 : vector<2x1xf32> to vector<2x16xf32>
    %29 = arith.cmpf oeq, %24, %28 : vector<2x16xf32>
    %c16_i32_13 = arith.constant 16 : i32
    %30 = vector.broadcast %c16_i32_13 : i32 to vector<2x16xi32>
    %31 = arith.select %29, %10, %30 : vector<2x16xi1>, vector<2x16xi32>
    %cst_14 = arith.constant dense<2147483647> : vector<2xi32>
    %32 = vector.multi_reduction <minsi>, %31, %cst_14 [1] : vector<2x16xi32> to vector<2xi32>
    %33 = vector.shape_cast %32 : vector<2xi32> to vector<2x1xi32>
    %34 = vector.broadcast %33 : vector<2x1xi32> to vector<2x16xi32>
    %35 = arith.cmpi eq, %10, %34 : vector<2x16xi32>
    %cst_15 = arith.constant 0xFF800000 : f32
    %36 = vector.broadcast %cst_15 : f32 to vector<2x16xf32>
    %37 = arith.select %35, %36, %24 : vector<2x16xi1>, vector<2x16xf32>
    %cst_16 = arith.constant dense<0xFF800000> : vector<2xf32>
    %38 = vector.multi_reduction <maximumf>, %37, %cst_16 [1] : vector<2x16xf32> to vector<2xf32>
    %39 = vector.shape_cast %38 : vector<2xf32> to vector<2x1xf32>
    %40 = arith.addf %27, %39 : vector<2x1xf32>
    %41 = vector.broadcast %39 : vector<2x1xf32> to vector<2x16xf32>
    %42 = arith.cmpf oeq, %37, %41 : vector<2x16xf32>
    %c16_i32_17 = arith.constant 16 : i32
    %43 = vector.broadcast %c16_i32_17 : i32 to vector<2x16xi32>
    %44 = arith.select %42, %10, %43 : vector<2x16xi1>, vector<2x16xi32>
    %cst_18 = arith.constant dense<2147483647> : vector<2xi32>
    %45 = vector.multi_reduction <minsi>, %44, %cst_18 [1] : vector<2x16xi32> to vector<2xi32>
    %46 = vector.shape_cast %45 : vector<2xi32> to vector<2x1xi32>
    %47 = vector.broadcast %46 : vector<2x1xi32> to vector<2x16xi32>
    %48 = arith.cmpi eq, %10, %47 : vector<2x16xi32>
    %cst_19 = arith.constant 0xFF800000 : f32
    %49 = vector.broadcast %cst_19 : f32 to vector<2x16xf32>
    %50 = arith.select %48, %49, %37 : vector<2x16xi1>, vector<2x16xf32>
    %cst_20 = arith.constant dense<0xFF800000> : vector<2xf32>
    %51 = vector.multi_reduction <maximumf>, %50, %cst_20 [1] : vector<2x16xf32> to vector<2xf32>
    %52 = vector.shape_cast %51 : vector<2xf32> to vector<2x1xf32>
    %53 = arith.addf %40, %52 : vector<2x1xf32>
    %54 = vector.broadcast %52 : vector<2x1xf32> to vector<2x16xf32>
    %55 = arith.cmpf oeq, %50, %54 : vector<2x16xf32>
    %c16_i32_21 = arith.constant 16 : i32
    %56 = vector.broadcast %c16_i32_21 : i32 to vector<2x16xi32>
    %57 = arith.select %55, %10, %56 : vector<2x16xi1>, vector<2x16xi32>
    %cst_22 = arith.constant dense<2147483647> : vector<2xi32>
    %58 = vector.multi_reduction <minsi>, %57, %cst_22 [1] : vector<2x16xi32> to vector<2xi32>
    %59 = vector.shape_cast %58 : vector<2xi32> to vector<2x1xi32>
    %60 = vector.broadcast %59 : vector<2x1xi32> to vector<2x16xi32>
    %61 = arith.cmpi eq, %10, %60 : vector<2x16xi32>
    %cst_23 = arith.constant 0xFF800000 : f32
    %62 = vector.broadcast %cst_23 : f32 to vector<2x16xf32>
    %63 = arith.select %61, %62, %50 : vector<2x16xi1>, vector<2x16xf32>
    %cst_24 = arith.constant dense<0xFF800000> : vector<2xf32>
    %64 = vector.multi_reduction <maximumf>, %63, %cst_24 [1] : vector<2x16xf32> to vector<2xf32>
    %65 = vector.shape_cast %64 : vector<2xf32> to vector<2x1xf32>
    %66 = arith.addf %53, %65 : vector<2x1xf32>
    %67 = vector.broadcast %65 : vector<2x1xf32> to vector<2x16xf32>
    %68 = arith.cmpf oeq, %63, %67 : vector<2x16xf32>
    %c16_i32_25 = arith.constant 16 : i32
    %69 = vector.broadcast %c16_i32_25 : i32 to vector<2x16xi32>
    %70 = arith.select %68, %10, %69 : vector<2x16xi1>, vector<2x16xi32>
    %cst_26 = arith.constant dense<2147483647> : vector<2xi32>
    %71 = vector.multi_reduction <minsi>, %70, %cst_26 [1] : vector<2x16xi32> to vector<2xi32>
    %72 = vector.shape_cast %71 : vector<2xi32> to vector<2x1xi32>
    %73 = vector.broadcast %72 : vector<2x1xi32> to vector<2x16xi32>
    %74 = arith.cmpi eq, %10, %73 : vector<2x16xi32>
    %cst_27 = arith.constant 0xFF800000 : f32
    %75 = vector.broadcast %cst_27 : f32 to vector<2x16xf32>
    %76 = arith.select %74, %75, %63 : vector<2x16xi1>, vector<2x16xf32>
    %cst_28 = arith.constant dense<0xFF800000> : vector<2xf32>
    %77 = vector.multi_reduction <maximumf>, %76, %cst_28 [1] : vector<2x16xf32> to vector<2xf32>
    %78 = vector.shape_cast %77 : vector<2xf32> to vector<2x1xf32>
    %79 = arith.addf %66, %78 : vector<2x1xf32>
    %80 = vector.broadcast %78 : vector<2x1xf32> to vector<2x16xf32>
    %81 = arith.cmpf oeq, %76, %80 : vector<2x16xf32>
    %c16_i32_29 = arith.constant 16 : i32
    %82 = vector.broadcast %c16_i32_29 : i32 to vector<2x16xi32>
    %83 = arith.select %81, %10, %82 : vector<2x16xi1>, vector<2x16xi32>
    %cst_30 = arith.constant dense<2147483647> : vector<2xi32>
    %84 = vector.multi_reduction <minsi>, %83, %cst_30 [1] : vector<2x16xi32> to vector<2xi32>
    %85 = vector.shape_cast %84 : vector<2xi32> to vector<2x1xi32>
    %86 = vector.broadcast %85 : vector<2x1xi32> to vector<2x16xi32>
    %87 = arith.cmpi eq, %10, %86 : vector<2x16xi32>
    %cst_31 = arith.constant 0xFF800000 : f32
    %88 = vector.broadcast %cst_31 : f32 to vector<2x16xf32>
    %89 = arith.select %87, %88, %76 : vector<2x16xi1>, vector<2x16xf32>
    %cst_32 = arith.constant dense<0xFF800000> : vector<2xf32>
    %90 = vector.multi_reduction <maximumf>, %89, %cst_32 [1] : vector<2x16xf32> to vector<2xf32>
    %91 = vector.shape_cast %90 : vector<2xf32> to vector<2x1xf32>
    %92 = arith.addf %79, %91 : vector<2x1xf32>
    %93 = vector.broadcast %91 : vector<2x1xf32> to vector<2x16xf32>
    %94 = arith.cmpf oeq, %89, %93 : vector<2x16xf32>
    %c16_i32_33 = arith.constant 16 : i32
    %95 = vector.broadcast %c16_i32_33 : i32 to vector<2x16xi32>
    %96 = arith.select %94, %10, %95 : vector<2x16xi1>, vector<2x16xi32>
    %cst_34 = arith.constant dense<2147483647> : vector<2xi32>
    %97 = vector.multi_reduction <minsi>, %96, %cst_34 [1] : vector<2x16xi32> to vector<2xi32>
    %98 = vector.shape_cast %97 : vector<2xi32> to vector<2x1xi32>
    %99 = vector.broadcast %98 : vector<2x1xi32> to vector<2x16xi32>
    %100 = arith.cmpi eq, %10, %99 : vector<2x16xi32>
    %cst_35 = arith.constant 0xFF800000 : f32
    %101 = vector.broadcast %cst_35 : f32 to vector<2x16xf32>
    %102 = arith.select %100, %101, %89 : vector<2x16xi1>, vector<2x16xf32>
    %cst_36 = arith.constant dense<0xFF800000> : vector<2xf32>
    %103 = vector.multi_reduction <maximumf>, %102, %cst_36 [1] : vector<2x16xf32> to vector<2xf32>
    %104 = vector.shape_cast %103 : vector<2xf32> to vector<2x1xf32>
    %105 = arith.addf %92, %104 : vector<2x1xf32>
    %106 = vector.shape_cast %105 : vector<2x1xf32> to vector<1x2x1xf32>
    %cst_37 = arith.constant dense<0.000000e+00> : vector<1xf32>
    %107 = vector.multi_reduction <add>, %106, %cst_37 [1, 2] : vector<1x2x1xf32> to vector<1xf32>
    %108 = vector.shape_cast %107 : vector<1xf32> to vector<1x1x1xf32>
    %109 = vector.extract %108[0, 0, 0] : f32 from vector<1x1x1xf32>
    %110 = vector.broadcast %109 : f32 to vector<1x8x128xf32>
    %c0_38 = arith.constant 0 : index
    %c0_39 = arith.constant 0 : index
    %c0_40 = arith.constant 0 : index
    %111 = vector.load %arg4[%c0_38, %c0_39, %c0_40] : memref<1x8x128xf32, #tpu.memory_space<vmem>>, vector<1x8x128xf32>
    tpu.vector_store %arg4[%c0_38, %c0_39, %c0_40], %110 {strides = array<i32>} : memref<1x8x128xf32, #tpu.memory_space<vmem>>, vector<1x8x128xf32>,
    return
  }
  func.func @transform_0(%arg0: i32) -> (i32, i32, i32) {
    %c0_i32 = arith.constant 0 : i32
    %c0_i32_0 = arith.constant 0 : i32
    %c0_i32_1 = arith.constant 0 : i32
    return %arg0, %c0_i32, %c0_i32_0 : i32, i32, i32
  }
  func.func @transform_1(%arg0: i32) -> (i32, i32, i32) {
    %c0_i32 = arith.constant 0 : i32
    %c0_i32_0 = arith.constant 0 : i32
    %c0_i32_1 = arith.constant 0 : i32
    return %arg0, %c0_i32, %c0_i32_0 : i32, i32, i32
  }
  func.func @transform_2(%arg0: i32) -> (i32, i32) {
    %c0_i32 = arith.constant 0 : i32
    %c0_i32_0 = arith.constant 0 : i32
    return %arg0, %c0_i32 : i32, i32
  }
  func.func @transform_3(%arg0: i32) -> (i32, i32, i32) {
    %c0_i32 = arith.constant 0 : i32
    %c0_i32_0 = arith.constant 0 : i32
    %c0_i32_1 = arith.constant 0 : i32
    return %arg0, %c0_i32, %c0_i32_0 : i32, i32, i32
  }
}

</mosaic_0001>

<bundles_post_ra>
// kernel: tpu_custom_call.1
= control target key start
LH: loop header
LB: loop body
LE: loop exit
PB: predicated region body
PF: predicated region fallthrough
CT: control target
= control target key end

     0   :  { %8 = vsyncpa [#allocation3], 0  ;;  %s590_s0 = inlined_call_operand.hbm [shape: f32[2,16,256], index: 0, kind: input, shape index: {}]   ;;  %s591_s1 = inlined_call_operand.hbm [shape: f32[2,16,256], index: 1, kind: input, shape index: {}]   ;;  %s592_s2 = inlined_call_operand.vmem [shape: f32[2,16], index: 2, kind: input, shape index: {}]   ;;  %s593_s3 = inlined_call_operand.hbm [shape: f32[1,8,128], index: 3, kind: output, shape index: {}]  }
   0x1   :  { %9 = vsyncpa [#allocation6], 0 }
   0x2   :  { %10 = vsyncpa [#allocation4], 0  ;;  %s491_s12 = smov [#allocation2]  }
   0x3   :  { %s16_s13 = sshll.u32 %s491_s12, 4  ;;  %s17_s13 = int_to_ptr.vmem [resolvable:$true] %s16_s13 }
   0x4   :  { %s433_s14 = scalar_lea.vmem %s17_s13, 1024  ;;  %p438_p1 = scmp.lt.s32.totalorder %s17_s13, %s17_s13 }
   0x5   :  { %p434_p0 = scmp.ne.s32.totalorder %s17_s13, %s433_s14  ;;  %p439_p2 = scmp.lt.s32.totalorder %s433_s14, %s433_s14 }
   0x7   :  { %p440_p3 = por %p439_p2, %p438_p1 }
   0x9   :  { %p441_p4 = pnand %p440_p3, %p434_p0 }
   0xb   :  { %444 = shalt.err (!%p441_p4)
}
   0xc   :  { %s492_s15 = smov 256   ;;  %s493_s16 = smov 16  }
   0xd   :  { %22 = dma.hbm_to_vmem [thread:$0]  %s590_s0, 1024, %s17_s13, [#allocation3], %s492_s15, %s492_s15, %s493_s16  }
   0xe   :  { %s494_s19 = smov [#allocation5]  }
   0xf   :  { %s28_s20 = sshll.u32 %s494_s19, 4  ;;  %s29_s20 = int_to_ptr.vmem [resolvable:$true] %s28_s20 }
  0x10   :  { %s453_s21 = scalar_lea.vmem %s29_s20, 1024  ;;  %p458_p6 = scmp.lt.s32.totalorder %s29_s20, %s29_s20 }
  0x11   :  { %p454_p5 = scmp.ne.s32.totalorder %s29_s20, %s453_s21  ;;  %p459_p7 = scmp.lt.s32.totalorder %s453_s21, %s453_s21 }
  0x13   :  { %p460_p8 = por %p459_p7, %p458_p6 }
  0x15   :  { %p461_p9 = pnand %p460_p8, %p454_p5 }
  0x17   :  { %464 = shalt.err (!%p461_p9)
}
  0x18   :  { %34 = dma.hbm_to_vmem [thread:$0]  %s591_s1, 1024, %s29_s20, [#allocation6], %s492_s15, %s492_s15, %s493_s16  }
  0x19   :  { %485 = dma.done.wait [#allocation3], 1024  }
  0x1a   :  { %486 = vsyncadd [#allocation3], 4294966272 }
  0x1b   :  { %487 = dma.done.wait [#allocation6], 1024  }
  0x1c   :  { %488 = vsyncadd [#allocation6], 4294966272  ;;  %v47_v0 = vld [vmem:[#allocation2 + $0x20] sm:$0xff]  ;;  %v48_v1 = vld [vmem:[#allocation2 + $0x28] sm:$0xff]  ;;  %v94_v36 = vlaneseq  ;;  %v495_v43 = vmov 0   ;;  %vm151_vm0 = vcmask 130112  }
  0x1d   :  { %v55_v2 = vld [vmem:[#allocation5 + $0x20] sm:$0xff]  ;;  %v56_v3 = vld [vmem:[#allocation5 + $0x28] sm:$0xff]  ;;  %v49_v10 = vld [vmem:[#allocation2 + $0x30] sm:$0xff]  ;;  %424 = vset.pattern.permute.xlu1 %v495_v43  ;;  %423 = vset.pattern.permute.xlu0 %v495_v43  ;;  %vm162_vm1 = vcmask 1041409   ;;  %vm165_vm2 = vcmask 123904  }
  0x1e   :  { %v63_v4 = vsub.f32 %v47_v0, %v55_v2  ;;  %v43_v5 = vld [vmem:[#allocation2] sm:$0xff]  ;;  %v44_v6 = vld [vmem:[#allocation2 + $0x8] sm:$0xff]  ;;  %v64_v7 = vsub.f32 %v48_v1, %v56_v3  ;;  %v50_v14 = vld [vmem:[#allocation2 + $0x38] sm:$0xff]  ;;  %v95_v37 = vshrl.u32 %v94_v36, 7  ;;  %v526_v61 = vand.u32 127, %v94_v36 }
  0x1f   :  { %v51_v8 = vld [vmem:[#allocation5] sm:$0xff]  ;;  %v52_v9 = vld [vmem:[#allocation5 + $0x8] sm:$0xff]  ;;  %v57_v15 = vld [vmem:[#allocation5 + $0x30] sm:$0xff] }
  0x20   :  { %v71_v11 = vmul.f32 %v63_v4, %v63_v4  ;;  %v59_v12 = vsub.f32 %v43_v5, %v51_v8  ;;  %v60_v13 = vsub.f32 %v44_v6, %v52_v9  ;;  %v58_v16 = vld [vmem:[#allocation5 + $0x38] sm:$0xff]  ;;  %v72_v17 = vmul.f32 %v64_v7, %v64_v7  ;;  %v45_v20 = vld [vmem:[#allocation2 + $0x10] sm:$0xff]  ;;  %v91_v38 = vld [vmem:[%s592_s2] sm:$0x3]  ;;  %s496_s2 = smov [#allocation7]  }
  0x21   :  { %v65_v18 = vsub.f32 %v49_v10, %v57_v15  ;;  %v66_v19 = vsub.f32 %v50_v14, %v58_v16  ;;  %v46_v21 = vld [vmem:[#allocation2 + $0x18] sm:$0xff]  ;;  %v53_v22 = vld [vmem:[#allocation5 + $0x10] sm:$0xff]  ;;  %v92_v39 = vmul.f32 %v91_v38, %v91_v38  ;;  %v96_v40 = vsub.s32 0, %v95_v37  ;;  %s405_s24 = sshll.u32 %s496_s2, 4  ;;  %s406_s24 = int_to_ptr.vmem [resolvable:$true] %s405_s24 }
  0x22   :  { %v67_v23 = vmul.f32 %v59_v12, %v59_v12  ;;  %v68_v24 = vmul.f32 %v60_v13, %v60_v13  ;;  %v54_v25 = vld [vmem:[#allocation5 + $0x18] sm:$0xff]  ;;  %v61_v26 = vsub.f32 %v45_v20, %v53_v22  ;;  %v81_v27 = vadd.f32 %v72_v17, %v71_v11  ;;  %s465_s26 = scalar_lea.vmem %s406_s24, 128  ;;  %p470_p11 = scmp.lt.s32.totalorder %s406_s24, %s406_s24 }
  0x23   :  { %v73_v28 = vmul.f32 %v65_v18, %v65_v18  ;;  %v74_v29 = vmul.f32 %v66_v19, %v66_v19  ;;  %v62_v30 = vsub.f32 %v46_v21, %v54_v25  ;;  %v97_v41 = vrot.slane %v92_v39, %v96_v40  ;;  %p466_p10 = scmp.ne.s32.totalorder %s406_s24, %s465_s26  ;;  %p471_p12 = scmp.lt.s32.totalorder %s465_s26, %s465_s26 }
  0x24   :  { %v75_v31 = vadd.f32 %v68_v24, %v67_v23  ;;  %v69_v32 = vmul.f32 %v61_v26, %v61_v26  ;;  %82 = vadd.xlane.f32.xlu1 %v81_v27  ;;  %v107_v42 = vsub.s32 1, %v95_v37  ;;  %v146_v62 = vadd.s32 4294967288, %v526_v61 }
  0x25   :  { %v84_v33 = vadd.f32 %v74_v29, %v73_v28  ;;  %v70_v34 = vmul.f32 %v62_v30, %v62_v30  ;;  %v144_v1 = vsub.s32 %v526_v61, %v95_v37  ;;  %p472_p13 = por %p471_p12, %p470_p11 }
  0x26   :  { %76 = vadd.xlane.f32.xlu0 %v75_v31  ;;  %v108_v44 = vrot.slane %v92_v39, %v107_v42  ;;  %v149_v0 = vsub.s32 %v146_v62, %v95_v37 }
  0x27   :  { %v78_v35 = vadd.f32 %v70_v34, %v69_v32  ;;  %p473_p0 = pnand %p472_p13, %p466_p10 }
  0x28   :  { %85 = vadd.xlane.f32.xlu1 %v84_v33 }
  0x2a   :  { %79 = vadd.xlane.f32.xlu0 %v78_v35 }
  0x39   :  { %103 = vbcast.lane.b32.xlu1 %v97_v41, 264 }
  0x3d   :  { %110 = vbcast.lane.b32.xlu1 %v108_v44, 256 }
  0x40   :  { %99 = vbcast.lane.b32.xlu0 %v97_v41, 256 }
  0x41   :  { %114 = vbcast.lane.b32.xlu1 %v108_v44, 264 }
  0xad   :  { %v83_v45 = vpop.xlane.xlu1 %82 }
  0xae   :  { %v89_v55 = vmul.f32 0.001953125, %v83_v45 }
  0xaf   :  { %v77_v46 = vpop.xlane.xlu0 %76 }
  0xb0   :  { %v87_v50 = vmul.f32 0.001953125, %v77_v46 }
  0xb1   :  { %v86_v47 = vpop.xlane.xlu1 %85 }
  0xb2   :  { %v90_v58 = vmul.f32 0.001953125, %v86_v47 }
  0xb3   :  { %v80_v48 = vpop.xlane.xlu0 %79 }
  0xb4   :  { %v88_v49 = vmul.f32 0.001953125, %v80_v48 }
  0xb5   :  { %v104_v51 = vpop.permute.xlu1 %103 }
  0xb6   :  { %v121_v52 = vmul.f32 %v104_v51, %v88_v49 }
  0xb7   :  { %v100_v53 = vpop.permute.xlu0 %99 }
  0xb8   :  { %v120_v54 = vmul.f32 %v100_v53, %v87_v50  ;;  %134 = vperm.xlu1 %424, %v121_v52  }
  0xb9   :  { %v111_v56 = vpop.permute.xlu1 %110 }
  0xba   :  { %131 = vperm.xlu0 %423, %v120_v54   ;;  %v122_v57 = vmul.f32 %v111_v56, %v89_v55 }
  0xbc   :  { %137 = vperm.xlu1 %424, %v122_v57  }
  0xbd   :  { %v115_v59 = vpop.permute.xlu1 %114 }
  0xbe   :  { %v123_v60 = vmul.f32 %v115_v59, %v90_v58 }
  0xc0   :  { %140 = vperm.xlu0 %423, %v123_v60  }
  0xc4   :  { %186 = vbcast.lane.b32.xlu0 %v526_v61, 256 }
  0xc8   :  { %190 = vbcast.lane.b32.xlu0 %v526_v61, 264 }
 0x133   :  { %v135_v63 = vpop.permute.xlu1 %134 }
 0x134   :  { %v150_v4 = vrot.slane %v135_v63, %v149_v0 }
 0x135   :  { %v132_v2 = vpop.permute.xlu0 %131 }
 0x136   :  { %v145_v5 = vrot.slane %v132_v2, %v144_v1 }
 0x137   :  { %v138_v3 = vpop.permute.xlu1 %137 }
 0x138   :  { %v156_v7 = vrot.slane %v138_v3, %v144_v1  ;;  %v152_v9 = vsel %vm151_vm0, %v150_v4, %v145_v5 }
 0x13b   :  { %v141_v6 = vpop.permute.xlu0 %140 }
 0x13c   :  { %v160_v8 = vrot.slane %v141_v6, %v149_v0 }
 0x13e   :  { %v161_v10 = vsel %vm151_vm0, %v160_v8, %v156_v7 }
 0x13f   :  { %v163_v11 = vsel %vm162_vm1, %v161_v10, %v152_v9  ;;  %v187_v13 = vpop.permute.xlu0 %186 }
 0x140   :  { %v166_v12 = vsel %vm165_vm2, %v163_v11, -inf }
 0x141   :  { %167 = vmax.xlane.f32.xlu1 %v166_v12 }
 0x143   :  { %v191_v18 = vpop.permute.xlu0 %190 }
 0x1ca   :  { %v536_v14 = vpop.xlane.xlu1 %167 }
 0x1cb   :  { %v174_v15 = vrot.slane %v536_v14, %v96_v40  ;;  %v178_v17 = vrot.slane %v536_v14, %v107_v42 }
 0x1cd   :  { %vm181_vm3 = vcmp.eq.f32.partialorder %v120_v54, %v174_v15  ;;  %vm182_vm4 = vcmp.eq.f32.partialorder %v121_v52, %v174_v15  ;;  %vm183_vm5 = vcmp.eq.f32.partialorder %v122_v57, %v178_v17  ;;  %vm184_vm6 = vcmp.eq.f32.partialorder %v123_v60, %v178_v17 }
 0x1ce   :  { %v192_v16 = vsel %vm181_vm3, %v187_v13, 16  ;;  %v193_v19 = vsel %vm182_vm4, %v191_v18, 16  ;;  %v194_v20 = vsel %vm183_vm5, %v187_v13, 16  ;;  %v195_v21 = vsel %vm184_vm6, %v191_v18, 16 }
 0x1cf   :  { %197 = vperm.xlu0 %423, %v192_v16  }
 0x1d3   :  { %200 = vperm.xlu0 %423, %v193_v19  }
 0x1d7   :  { %203 = vperm.xlu0 %423, %v194_v20  }
 0x1db   :  { %206 = vperm.xlu0 %423, %v195_v21  }
 0x24a   :  { %v198_v22 = vpop.permute.xlu0 %197 }
 0x24b   :  { %v211_v27 = vrot.slane %v198_v22, %v144_v1 }
 0x24e   :  { %v201_v23 = vpop.permute.xlu0 %200 }
 0x24f   :  { %v215_v25 = vrot.slane %v201_v23, %v149_v0 }
 0x251   :  { %v216_v30 = vsel %vm151_vm0, %v215_v25, %v211_v27 }
 0x252   :  { %v204_v24 = vpop.permute.xlu0 %203 }
 0x253   :  { %v220_v28 = vrot.slane %v204_v24, %v144_v1 }
 0x256   :  { %v207_v26 = vpop.permute.xlu0 %206 }
 0x257   :  { %v224_v29 = vrot.slane %v207_v26, %v149_v0 }
 0x259   :  { %v225_v31 = vsel %vm151_vm0, %v224_v29, %v220_v28 }
 0x25a   :  { %v226_v32 = vsel %vm162_vm1, %v225_v31, %v216_v30 }
 0x25b   :  { %v227_v33 = vsel %vm165_vm2, %v226_v32, 2147483647 }
 0x25c   :  { %v229_v34 = vshra.s32 %v227_v33, 16  ;;  %v228_v36 = vand.u32 65535, %v227_v33 }
 0x25e   :  { %v231_v35 = vcvt.s32.f32 %v229_v34  ;;  %v230_v38 = vcvt.s32.f32 %v228_v36 }
 0x260   :  { %232 = vmin.xlane.f32.xlu0 %v231_v35 }
 0x2e9   :  { %v233_v37 = vpop.xlane.xlu0 %232 }
 0x2ea   :  { %vm234_vm7 = vcmp.eq.f32.partialorder %v231_v35, %v233_v37  ;;  %v239_v40 = vcvt.f32.s32 %v233_v37 }
 0x2eb   :  { %v235_v39 = vsel %vm234_vm7, %v230_v38, inf }
 0x2ec   :  { %236 = vmin.xlane.f32.xlu1 %v235_v39  ;;  %v240_v42 = vshll.u32 %v239_v40, 16 }
 0x375   :  { %v237_v41 = vpop.xlane.xlu1 %236 }
 0x376   :  { %v238_v43 = vcvt.f32.s32 %v237_v41 }
 0x378   :  { %v241_v44 = vadd.s32 %v240_v42, %v238_v43 }
 0x37a   :  { %vm242_vm8 = vcmp.eq.s32.totalorder %v526_v61, %v241_v44 }
 0x37b   :  { %v243_v45 = vsel %vm242_vm8, -inf, %v163_v11 }
 0x37c   :  { %v244_v46 = vsel %vm165_vm2, %v243_v45, -inf }
 0x37d   :  { %245 = vmax.xlane.f32.xlu1 %v244_v46 }
 0x406   :  { %v546_v47 = vpop.xlane.xlu1 %245 }
 0x407   :  { %vm248_vm9 = vcmp.eq.f32.partialorder %v243_v45, %v546_v47 }
 0x408   :  { %v249_v48 = vsel %vm248_vm9, %v526_v61, 16 }
 0x409   :  { %v250_v49 = vsel %vm165_vm2, %v249_v48, 2147483647 }
 0x40a   :  { %v252_v50 = vshra.s32 %v250_v49, 16  ;;  %v251_v52 = vand.u32 65535, %v250_v49 }
 0x40c   :  { %v254_v51 = vcvt.s32.f32 %v252_v50  ;;  %v253_v54 = vcvt.s32.f32 %v251_v52 }
 0x40e   :  { %255 = vmin.xlane.f32.xlu1 %v254_v51 }
 0x497   :  { %v256_v53 = vpop.xlane.xlu1 %255 }
 0x498   :  { %vm257_vm10 = vcmp.eq.f32.partialorder %v254_v51, %v256_v53  ;;  %v262_v56 = vcvt.f32.s32 %v256_v53 }
 0x499   :  { %v258_v55 = vsel %vm257_vm10, %v253_v54, inf }
 0x49a   :  { %259 = vmin.xlane.f32.xlu1 %v258_v55  ;;  %v263_v58 = vshll.u32 %v262_v56, 16 }
 0x523   :  { %v260_v57 = vpop.xlane.xlu1 %259 }
 0x524   :  { %v261_v59 = vcvt.f32.s32 %v260_v57 }
 0x526   :  { %v264_v60 = vadd.s32 %v263_v58, %v261_v59 }
 0x528   :  { %vm265_vm11 = vcmp.eq.s32.totalorder %v526_v61, %v264_v60 }
 0x529   :  { %v266_v62 = vsel %vm265_vm11, -inf, %v243_v45 }
 0x52a   :  { %v267_v63 = vsel %vm165_vm2, %v266_v62, -inf }
 0x52b   :  { %268 = vmax.xlane.f32.xlu1 %v267_v63 }
 0x5b4   :  { %v553_v0 = vpop.xlane.xlu1 %268 }
 0x5b5   :  { %vm271_vm12 = vcmp.eq.f32.partialorder %v266_v62, %v553_v0 }
 0x5b6   :  { %v272_v1 = vsel %vm271_vm12, %v526_v61, 16  ;;  %vm386_vm12 = vcmask 1024  }
 0x5b7   :  { %v273_v2 = vsel %vm165_vm2, %v272_v1, 2147483647 }
 0x5b8   :  { %v275_v3 = vshra.s32 %v273_v2, 16  ;;  %v274_v5 = vand.u32 65535, %v273_v2 }
 0x5ba   :  { %v277_v4 = vcvt.s32.f32 %v275_v3  ;;  %v276_v7 = vcvt.s32.f32 %v274_v5 }
 0x5bc   :  { %278 = vmin.xlane.f32.xlu0 %v277_v4 }
 0x645   :  { %v279_v6 = vpop.xlane.xlu0 %278 }
 0x646   :  { %vm280_vm13 = vcmp.eq.f32.partialorder %v277_v4, %v279_v6  ;;  %v285_v9 = vcvt.f32.s32 %v279_v6 }
 0x647   :  { %v281_v8 = vsel %vm280_vm13, %v276_v7, inf }
 0x648   :  { %282 = vmin.xlane.f32.xlu1 %v281_v8  ;;  %v286_v11 = vshll.u32 %v285_v9, 16 }
 0x6d1   :  { %v283_v10 = vpop.xlane.xlu1 %282 }
 0x6d2   :  { %v284_v12 = vcvt.f32.s32 %v283_v10 }
 0x6d4   :  { %v287_v13 = vadd.s32 %v286_v11, %v284_v12 }
 0x6d6   :  { %vm288_vm14 = vcmp.eq.s32.totalorder %v526_v61, %v287_v13 }
 0x6d7   :  { %v289_v15 = vsel %vm288_vm14, -inf, %v266_v62 }
 0x6d8   :  { %v290_v16 = vsel %vm165_vm2, %v289_v15, -inf }
 0x6d9   :  { %291 = vmax.xlane.f32.xlu0 %v290_v16 }
 0x762   :  { %v560_v17 = vpop.xlane.xlu0 %291 }
 0x763   :  { %vm294_vm15 = vcmp.eq.f32.partialorder %v289_v15, %v560_v17 }
 0x764   :  { %v295_v18 = vsel %vm294_vm15, %v526_v61, 16 }
 0x765   :  { %v296_v19 = vsel %vm165_vm2, %v295_v18, 2147483647 }
 0x766   :  { %v298_v20 = vshra.s32 %v296_v19, 16  ;;  %v297_v22 = vand.u32 65535, %v296_v19 }
 0x768   :  { %v300_v21 = vcvt.s32.f32 %v298_v20  ;;  %v299_v24 = vcvt.s32.f32 %v297_v22  ;;  %v247_v22 = vadd.f32 %v546_v47, %v536_v14 }
 0x76a   :  { %301 = vmin.xlane.f32.xlu1 %v300_v21 }
 0x7f3   :  { %v302_v23 = vpop.xlane.xlu1 %301 }
 0x7f4   :  { %vm303_vm0 = vcmp.eq.f32.partialorder %v300_v21, %v302_v23  ;;  %v308_v26 = vcvt.f32.s32 %v302_v23  ;;  %v270_v23 = vadd.f32 %v553_v0, %v247_v22 }
 0x7f5   :  { %v304_v25 = vsel %vm303_vm0, %v299_v24, inf }
 0x7f6   :  { %305 = vmin.xlane.f32.xlu0 %v304_v25  ;;  %v309_v28 = vshll.u32 %v308_v26, 16  ;;  %v293_v24 = vadd.f32 %v560_v17, %v270_v23 }
 0x87f   :  { %v306_v27 = vpop.xlane.xlu0 %305 }
 0x880   :  { %v307_v29 = vcvt.f32.s32 %v306_v27 }
 0x882   :  { %v310_v30 = vadd.s32 %v309_v28, %v307_v29 }
 0x884   :  { %vm311_vm1 = vcmp.eq.s32.totalorder %v526_v61, %v310_v30 }
 0x885   :  { %v312_v31 = vsel %vm311_vm1, -inf, %v289_v15 }
 0x886   :  { %v313_v32 = vsel %vm165_vm2, %v312_v31, -inf }
 0x887   :  { %314 = vmax.xlane.f32.xlu1 %v313_v32 }
 0x910   :  { %v567_v33 = vpop.xlane.xlu1 %314 }
 0x911   :  { %vm317_vm3 = vcmp.eq.f32.partialorder %v312_v31, %v567_v33  ;;  %v316_v25 = vadd.f32 %v567_v33, %v293_v24 }
 0x912   :  { %v318_v34 = vsel %vm317_vm3, %v526_v61, 16 }
 0x913   :  { %v319_v35 = vsel %vm165_vm2, %v318_v34, 2147483647 }
 0x914   :  { %v321_v36 = vshra.s32 %v319_v35, 16  ;;  %v320_v38 = vand.u32 65535, %v319_v35 }
 0x916   :  { %v323_v37 = vcvt.s32.f32 %v321_v36  ;;  %v322_v40 = vcvt.s32.f32 %v320_v38 }
 0x918   :  { %324 = vmin.xlane.f32.xlu0 %v323_v37 }
 0x9a1   :  { %v325_v39 = vpop.xlane.xlu0 %324 }
 0x9a2   :  { %vm326_vm4 = vcmp.eq.f32.partialorder %v323_v37, %v325_v39  ;;  %v331_v42 = vcvt.f32.s32 %v325_v39 }
 0x9a3   :  { %v327_v41 = vsel %vm326_vm4, %v322_v40, inf }
 0x9a4   :  { %328 = vmin.xlane.f32.xlu1 %v327_v41  ;;  %v332_v44 = vshll.u32 %v331_v42, 16 }
 0xa2d   :  { %v329_v43 = vpop.xlane.xlu1 %328 }
 0xa2e   :  { %v330_v45 = vcvt.f32.s32 %v329_v43 }
 0xa30   :  { %v333_v46 = vadd.s32 %v332_v44, %v330_v45 }
 0xa32   :  { %vm334_vm5 = vcmp.eq.s32.totalorder %v526_v61, %v333_v46 }
 0xa33   :  { %v335_v48 = vsel %vm334_vm5, -inf, %v312_v31 }
 0xa34   :  { %v336_v49 = vsel %vm165_vm2, %v335_v48, -inf }
 0xa35   :  { %337 = vmax.xlane.f32.xlu0 %v336_v49 }
 0xabe   :  { %v338_v50 = vpop.xlane.xlu0 %337 }
 0xabf   :  { %vm340_vm6 = vcmp.eq.f32.partialorder %v335_v48, %v338_v50  ;;  %v339_v26 = vadd.f32 %v338_v50, %v316_v25 }
 0xac0   :  { %v341_v51 = vsel %vm340_vm6, %v526_v61, 16 }
 0xac1   :  { %v342_v52 = vsel %vm165_vm2, %v341_v51, 2147483647 }
 0xac2   :  { %v344_v53 = vshra.s32 %v342_v52, 16  ;;  %v343_v55 = vand.u32 65535, %v342_v52 }
 0xac4   :  { %v346_v54 = vcvt.s32.f32 %v344_v53  ;;  %v345_v57 = vcvt.s32.f32 %v343_v55 }
 0xac6   :  { %347 = vmin.xlane.f32.xlu1 %v346_v54 }
 0xb4f   :  { %v348_v56 = vpop.xlane.xlu1 %347 }
 0xb50   :  { %vm349_vm7 = vcmp.eq.f32.partialorder %v346_v54, %v348_v56  ;;  %v354_v59 = vcvt.f32.s32 %v348_v56 }
 0xb51   :  { %v350_v58 = vsel %vm349_vm7, %v345_v57, inf }
 0xb52   :  { %351 = vmin.xlane.f32.xlu0 %v350_v58  ;;  %v355_v62 = vshll.u32 %v354_v59, 16 }
 0xbdb   :  { %v352_v60 = vpop.xlane.xlu0 %351 }
 0xbdc   :  { %v353_v63 = vcvt.f32.s32 %v352_v60 }
 0xbde   :  { %v356_v1 = vadd.s32 %v355_v62, %v353_v63 }
 0xbe0   :  { %vm357_vm8 = vcmp.eq.s32.totalorder %v526_v61, %v356_v1 }
 0xbe1   :  { %v358_v2 = vsel %vm357_vm8, -inf, %v335_v48 }
 0xbe2   :  { %v359_v3 = vsel %vm165_vm2, %v358_v2, -inf }
 0xbe3   :  { %360 = vmax.xlane.f32.xlu1 %v359_v3 }
 0xc6c   :  { %v361_v4 = vpop.xlane.xlu1 %360 }
 0xc6d   :  { %vm363_vm9 = vcmp.eq.f32.partialorder %v358_v2, %v361_v4  ;;  %v362_v27 = vadd.f32 %v361_v4, %v339_v26 }
 0xc6e   :  { %v364_v5 = vsel %vm363_vm9, %v526_v61, 16 }
 0xc6f   :  { %v365_v6 = vsel %vm165_vm2, %v364_v5, 2147483647 }
 0xc70   :  { %v367_v7 = vshra.s32 %v365_v6, 16  ;;  %v366_v9 = vand.u32 65535, %v365_v6 }
 0xc72   :  { %v369_v8 = vcvt.s32.f32 %v367_v7  ;;  %v368_v11 = vcvt.s32.f32 %v366_v9 }
 0xc74   :  { %370 = vmin.xlane.f32.xlu0 %v369_v8 }
 0xcfd   :  { %v371_v10 = vpop.xlane.xlu0 %370 }
 0xcfe   :  { %vm372_vm10 = vcmp.eq.f32.partialorder %v369_v8, %v371_v10  ;;  %v377_v13 = vcvt.f32.s32 %v371_v10 }
 0xcff   :  { %v373_v12 = vsel %vm372_vm10, %v368_v11, inf }
 0xd00   :  { %374 = vmin.xlane.f32.xlu1 %v373_v12  ;;  %v378_v16 = vshll.u32 %v377_v13, 16 }
 0xd89   :  { %v375_v15 = vpop.xlane.xlu1 %374 }
 0xd8a   :  { %v376_v18 = vcvt.f32.s32 %v375_v15 }
 0xd8c   :  { %v379_v19 = vadd.s32 %v378_v16, %v376_v18 }
 0xd8e   :  { %vm380_vm11 = vcmp.eq.s32.totalorder %v526_v61, %v379_v19 }
 0xd8f   :  { %v381_v20 = vsel %vm380_vm11, -inf, %v358_v2 }
 0xd90   :  { %v382_v21 = vsel %vm165_vm2, %v381_v20, -inf }
 0xd91   :  { %383 = vmax.xlane.f32.xlu0 %v382_v21 }
 0xe1a   :  { %v384_v28 = vpop.xlane.xlu0 %383 }
 0xe1b   :  { %v385_v29 = vadd.f32 %v384_v28, %v362_v27 }
 0xe1d   :  { %v387_v30 = vsel %vm386_vm12, %v385_v29, 0.0 }
 0xe1e   :  { %388 = vadd.xlane.f32.xlu1 %v387_v30 }
 0xea7   :  { %v389_v61 = vpop.xlane.xlu1 %388 }
 0xea8   :  { %v390_v31 = vrot.slane %v389_v61, 4 }
 0xeaa   :  { %v391_v32 = vadd.f32 %v390_v31, %v389_v61 }
 0xeac   :  { %v392_v34 = vrot.slane %v391_v32, 2 }
 0xeae   :  { %v393_v35 = vadd.f32 %v392_v34, %v391_v32 }
 0xeb0   :  { %v394_v36 = vrot.slane %v393_v35, 1 }
 0xeb2   :  { %v395_v14 = vadd.f32 %v394_v36, %v393_v35 }
 0xeb4   :  { %415 = vpush %v395_v14 }
 0xee5   :  { %s416_s25 = spop %415 }
 0xee6   :  { %v397_v47 = vstv %s416_s25 }
 0xee7   :  { %398 = vst [vmem:[#allocation7] sm:$0xff] %v397_v47 }
 0xee8   :  { %476 = shalt.err (!%p473_p0)
}
 0xee9   :  { %408 = dma.vmem_to_hbm [thread:$0]  %s406_s24, 128, %s593_s3, [#allocation4]  }
 0xeea   :  { %489 = dma.done.wait [#allocation4], 128  }
 0xeeb   :  { %490 = vsyncadd [#allocation4], 4294967168 }
 0xeec   :  { %412 = vsyncpa [#allocation3], 1 }
 0xeed   :  { %413 = vsyncpa [#allocation6], 1 }
 0xeee   :  { %414 = vsyncpa [#allocation4], 1 }

</bundles_post_ra>
